<compile_context>
chip_gen: v7x
topology: tpu7x:2x2x1
jax: 0.10.0
libtpu: 0.0.40
codegen_flags: <defaults>
</compile_context>

<pallas_src>
import functools

import jax
import jax.numpy as jnp
from jax.experimental import pallas as pl
from jax.experimental.pallas import tpu as pltpu


def _round_up(x, m):
    return (x + m - 1) // m * m


def _cdiv(a, b):
    return (a + b - 1) // b


def _sublane(dtype):
    """Sublane packing granularity: 8 for 4-byte, 16 for 2-byte, 32 for 1-byte."""
    return max(8, 32 // jnp.dtype(dtype).itemsize)


def _vmem_budget_bytes():
    """Generation-aware scoped-VMEM budget (~half of physical per-core VMEM).

    v7x: 64 MiB physical -> 32 MiB budget; v5e/v6e: 128 MiB -> 64 MiB.
    Falls back to the smallest generation (v7x) if the query is unavailable.
    """
    phys = 64 << 20
    try:
        info = pltpu.get_tpu_info()
        phys = int(getattr(info, "vmem_capacity_bytes", phys)) or phys
    except Exception:
        pass
    return max(16 << 20, phys // 2)


def _probe_pipeline_mode():
    """Does this JAX support pl.BlockSpec(..., pipeline_mode=pl.Buffered(n))?"""
    try:
        pl.BlockSpec((8, 128), lambda b, s: (0, 0),
                     pipeline_mode=pl.Buffered(1))
        return True
    except (TypeError, AttributeError):
        return False


_HAS_PIPELINE_MODE = _probe_pipeline_mode()


def _param_spec(block_shape, single_buffer):
    """BlockSpec for a grid-invariant parameter (weight slice / bias)."""
    if single_buffer:
        return pl.BlockSpec(block_shape, lambda b, s: (0, 0),
                            pipeline_mode=pl.Buffered(1))
    return pl.BlockSpec(block_shape, lambda b, s: (0, 0))


def _decoder_kernel(*refs, num_features):
    """Per-(batch, spatial-tile) body: out = sum_k w_k @ x_k + bias.

    refs = [x_0 .. x_{n-1}] + [w_0 .. w_{n-1}] + [bias] + [out]
      x_k : (Cin_k, tile_hw)   (batch dim squeezed via BlockSpec None)
      w_k : (Cout, Cin_k)
      bias: (Cout, 1)
      out : (Cout, tile_hw)
    """
    x_refs = refs[:num_features]
    w_refs = refs[num_features:2 * num_features]
    b_ref = refs[2 * num_features]
    o_ref = refs[2 * num_features + 1]

    acc = jnp.dot(w_refs[0][...], x_refs[0][...],
                  preferred_element_type=jnp.float32)
    for k in range(1, num_features):
        acc = acc + jnp.dot(w_refs[k][...], x_refs[k][...],
                            preferred_element_type=jnp.float32)
    o_ref[...] = (acc + b_ref[...]).astype(o_ref.dtype)


@functools.partial(jax.jit, static_argnames=("single_buffer_params",))
def _decoder_forward_impl(features, weight, bias, *, single_buffer_params):
    single_buffer_params = single_buffer_params and _HAS_PIPELINE_MODE

    num_features = len(features)
    B, _, H, W = features[0].shape
    for f in features:
        assert f.shape[0] == B and f.shape[2] == H and f.shape[3] == W
    Cout, Cin_total = weight.shape
    chans = [f.shape[1] for f in features]
    assert sum(chans) == Cin_total

    out_dtype = features[0].dtype
    out_itemsize = jnp.dtype(out_dtype).itemsize
    hw = H * W
    hw128 = _round_up(hw, 128)

    w_buffers = 1 if single_buffer_params else 2

    # ---- VMEM footprint model (includes (sublane, 128) layout padding) ----
    w_bytes = w_buffers * sum(
        _round_up(Cout, _sublane(weight.dtype)) * _round_up(c, 128)
        * jnp.dtype(weight.dtype).itemsize for c in chans)
    b_bytes = w_buffers * (_round_up(Cout, _sublane(bias.dtype)) * 128
                           * jnp.dtype(bias.dtype).itemsize)
    # Bytes per lane column: double-buffered x blocks + double-buffered output.
    lane_coef = 2 * sum(
        _round_up(c, _sublane(f.dtype)) * jnp.dtype(f.dtype).itemsize
        for f, c in zip(features, chans))
    lane_coef += 2 * _round_up(Cout, _sublane(out_dtype)) * out_itemsize

    vmem_budget = _vmem_budget_bytes()
    usable = int(0.8 * vmem_budget) - w_bytes - b_bytes
    tile_from_vmem = max(128, (usable // max(lane_coef, 1)) // 128 * 128)
    # Channel- and generation-aware tile; never shrink just because H*W is
    # awkward -- we pad the spatial dim up to the tile instead.
    tile_hw = max(128, min(8192, hw128, tile_from_vmem))

    # Spread padding evenly across tiles (waste < 128 columns per tile) ...
    num_tiles = _cdiv(hw128, tile_hw)
    tile_hw = _round_up(_cdiv(hw128, num_tiles), 128)
    # ... and guarantee >= 2 grid steps so both v7x TensorCores get work.
    if B * num_tiles == 1 and tile_hw > 128:
        num_tiles = 2
        tile_hw = _round_up(_cdiv(hw128, num_tiles), 128)
    hw_pad = num_tiles * tile_hw

    footprint = w_bytes + b_bytes + lane_coef * tile_hw
    vmem_limit = min(max(footprint + footprint // 2 + (2 << 20), 16 << 20),
                     vmem_budget)
    vmem_limit = int(max(vmem_limit, footprint + (1 << 20)))

    # ---- operands: flatten spatial dims (contiguous, free); pad if needed ----
    xs = []
    for f, c in zip(features, chans):
        xf = f.reshape(B, c, hw)
        if hw_pad != hw:
            xf = jnp.pad(xf, ((0, 0), (0, 0), (0, hw_pad - hw)))
        xs.append(xf)

    # Per-feature weight slices: fuses the channel concat into the kernel.
    w_slices = []
    off = 0
    for c in chans:
        w_slices.append(weight[:, off:off + c])
        off += c
    bias2d = bias.reshape(Cout, 1)

    x_specs = [pl.BlockSpec((None, c, tile_hw), lambda b, s: (b, 0, s))
               for c in chans]
    w_specs = [_param_spec((Cout, c), single_buffer_params) for c in chans]
    b_spec = _param_spec((Cout, 1), single_buffer_params)
    o_spec = pl.BlockSpec((None, Cout, tile_hw), lambda b, s: (b, 0, s))

    bytes_accessed = (
        sum(B * c * hw_pad * jnp.dtype(f.dtype).itemsize
            for f, c in zip(features, chans))
        + Cout * Cin_total * jnp.dtype(weight.dtype).itemsize
        + Cout * jnp.dtype(bias.dtype).itemsize
        + B * Cout * hw_pad * out_itemsize)
    cost = pl.CostEstimate(
        flops=2 * B * hw_pad * Cin_total * Cout,
        transcendentals=0,
        bytes_accessed=bytes_accessed,
    )

    out3d = pl.pallas_call(
        functools.partial(_decoder_kernel, num_features=num_features),
        out_shape=jax.ShapeDtypeStruct((B, Cout, hw_pad), out_dtype),
        grid_spec=pltpu.PrefetchScalarGridSpec(
            num_scalar_prefetch=0,
            grid=(B, num_tiles),
            in_specs=x_specs + w_specs + [b_spec],
            out_specs=o_spec,
        ),
        compiler_params=pltpu.CompilerParams(
            dimension_semantics=("parallel", "parallel"),
            vmem_limit_bytes=vmem_limit,
        ),
        cost_estimate=cost,
    )(*xs, *w_slices, bias2d)

    # Already NCHW; unflatten the spatial dim.  The slice (one extra output
    # copy) only runs when spatial padding was actually applied.
    if hw_pad != hw:
        out3d = out3d[:, :, :hw]
    return out3d.reshape(B, Cout, H, W)


def decoder_forward(features, weight, bias):
    """Concrete Decoder.forward: 1x1-conv projection of concatenated features.

    features: list of NCHW arrays with identical (B, H, W).
    weight:   (Cout, Cin_total) -- 1x1 conv weight (torch OIHW, 1x1 squeezed).
    bias:     (Cout,)
    returns:  (B, Cout, H, W) in NCHW.
    """
    try:
        return _decoder_forward_impl(features, weight, bias,
                                     single_buffer_params=True)
    except Exception:
        # Fallback for JAX builds that reject single-buffered param blocks.
        return _decoder_forward_impl(features, weight, bias,
                                     single_buffer_params=False)


if __name__ == "__main__":
    key = jax.random.PRNGKey(0)
    k1, k2, k3, k4 = jax.random.split(key, 4)

    # Small multi-scale-style feature list (already at a common spatial size).
    B, H, W = 2, 16, 16
    C1, C2 = 4, 4
    Cin = C1 + C2
    Cout = 8

    feat0 = jax.random.normal(k1, (B, C1, H, W), dtype=jnp.float32)
    feat1 = jax.random.normal(k2, (B, C2, H, W), dtype=jnp.float32)

    # 1x1-conv parameters, torch layout: weight (Cout, Cin), bias (Cout,).
    weight = jax.random.normal(k3, (Cout, Cin), dtype=jnp.float32) * 0.1
    bias = jax.random.normal(k4, (Cout,), dtype=jnp.float32) * 0.1

    out = decoder_forward([feat0, feat1], weight, bias)
    jax.block_until_ready(out)

    # Pure-JAX reference check (1x1 conv over concatenated channels).
    x = jnp.concatenate([feat0, feat1], axis=1)            # (B, Cin, H, W)
    ref = jnp.einsum("bchw,oc->bohw", x, weight) + bias[None, :, None, None]
    assert out.shape == (B, Cout, H, W)
    assert jnp.allclose(out, ref, atol=1e-5, rtol=1e-5)

    print("KERNEL_OK")
</pallas_src>

<mosaic_0001>
module attributes {stable_mosaic.version = 11 : i64} {
  func.func @_decoder_kernel(%arg0: i32, %arg1: i32, %arg2: memref<1x4x256xf32, #tpu.memory_space<vmem>>, %arg3: memref<1x4x256xf32, #tpu.memory_space<vmem>>, %arg4: memref<8x4xf32, #tpu.memory_space<vmem>>, %arg5: memref<8x4xf32, #tpu.memory_space<vmem>>, %arg6: memref<8x1xf32, #tpu.memory_space<vmem>>, %arg7: memref<1x8x256xf32, #tpu.memory_space<vmem>>) attributes {dimension_semantics = [#tpu.dimension_semantics<parallel>, #tpu.dimension_semantics<parallel>], iteration_bounds = array<i64: 2, 1>, scalar_prefetch = 0 : i64, scratch_operands = 0 : i64, tpu.core_type = #tpu.core_type<tc>, window_params = [{transform_indices = @transform_0, window_bounds = array<i64: 1, 4, 256>}, {transform_indices = @transform_1, window_bounds = array<i64: 1, 4, 256>}, {pipeline_mode = #tpu.pipeline_mode<synchronous>, transform_indices = @transform_2, window_bounds = array<i64: 8, 4>}, {pipeline_mode = #tpu.pipeline_mode<synchronous>, transform_indices = @transform_3, window_bounds = array<i64: 8, 4>}, {pipeline_mode = #tpu.pipeline_mode<synchronous>, transform_indices = @transform_4, window_bounds = array<i64: 8, 1>}, {transform_indices = @transform_5, window_bounds = array<i64: 1, 8, 256>}]} {
    %c0 = arith.constant 0 : index
    %c0_0 = arith.constant 0 : index
    %0 = vector.load %arg4[%c0, %c0_0] : memref<8x4xf32, #tpu.memory_space<vmem>>, vector<8x4xf32>
    %c0_1 = arith.constant 0 : index
    %c0_2 = arith.constant 0 : index
    %c0_3 = arith.constant 0 : index
    %1 = vector.load %arg2[%c0_1, %c0_2, %c0_3] : memref<1x4x256xf32, #tpu.memory_space<vmem>>, vector<1x4x256xf32>
    %2 = vector.shape_cast %1 : vector<1x4x256xf32> to vector<4x256xf32>
    %cst = arith.constant dense<0.000000e+00> : vector<8x256xf32>
    %3 = tpu.matmul %0, %2, %cst {dimension_numbers = #tpu.dot_dimension_numbers<[1], [0], [0], [1], [0, 0, 1, 1], [], []>} : vector<8x4xf32>, vector<4x256xf32>, vector<8x256xf32> -> vector<8x256xf32>
    %c0_4 = arith.constant 0 : index
    %c0_5 = arith.constant 0 : index
    %4 = vector.load %arg5[%c0_4, %c0_5] : memref<8x4xf32, #tpu.memory_space<vmem>>, vector<8x4xf32>
    %c0_6 = arith.constant 0 : index
    %c0_7 = arith.constant 0 : index
    %c0_8 = arith.constant 0 : index
    %5 = vector.load %arg3[%c0_6, %c0_7, %c0_8] : memref<1x4x256xf32, #tpu.memory_space<vmem>>, vector<1x4x256xf32>
    %6 = vector.shape_cast %5 : vector<1x4x256xf32> to vector<4x256xf32>
    %cst_9 = arith.constant dense<0.000000e+00> : vector<8x256xf32>
    %7 = tpu.matmul %4, %6, %cst_9 {dimension_numbers = #tpu.dot_dimension_numbers<[1], [0], [0], [1], [0, 0, 1, 1], [], []>} : vector<8x4xf32>, vector<4x256xf32>, vector<8x256xf32> -> vector<8x256xf32>
    %8 = arith.addf %3, %7 : vector<8x256xf32>
    %c0_10 = arith.constant 0 : index
    %c0_11 = arith.constant 0 : index
    %9 = vector.load %arg6[%c0_10, %c0_11] : memref<8x1xf32, #tpu.memory_space<vmem>>, vector<8x1xf32>
    %10 = vector.broadcast %9 : vector<8x1xf32> to vector<8x256xf32>
    %11 = arith.addf %8, %10 : vector<8x256xf32>
    %c0_12 = arith.constant 0 : index
    %c0_13 = arith.constant 0 : index
    %c0_14 = arith.constant 0 : index
    %12 = vector.load %arg7[%c0_12, %c0_13, %c0_14] : memref<1x8x256xf32, #tpu.memory_space<vmem>>, vector<1x8x256xf32>
    %13 = vector.shape_cast %12 : vector<1x8x256xf32> to vector<8x256xf32>
    %14 = vector.shape_cast %11 : vector<8x256xf32> to vector<1x8x256xf32>
    tpu.vector_store %arg7[%c0_12, %c0_13, %c0_14], %14 {strides = array<i32>} : memref<1x8x256xf32, #tpu.memory_space<vmem>>, vector<1x8x256xf32>,
    return
  }
  func.func @transform_0(%arg0: i32, %arg1: i32) -> (i32, i32, i32) {
    %c0_i32 = arith.constant 0 : i32
    %c0_i32_0 = arith.constant 0 : i32
    return %arg0, %c0_i32, %arg1 : i32, i32, i32
  }
  func.func @transform_1(%arg0: i32, %arg1: i32) -> (i32, i32, i32) {
    %c0_i32 = arith.constant 0 : i32
    %c0_i32_0 = arith.constant 0 : i32
    return %arg0, %c0_i32, %arg1 : i32, i32, i32
  }
  func.func @transform_2(%arg0: i32, %arg1: i32) -> (i32, i32) {
    %c0_i32 = arith.constant 0 : i32
    %c0_i32_0 = arith.constant 0 : i32
    %c0_i32_1 = arith.constant 0 : i32
    return %c0_i32, %c0_i32_0 : i32, i32
  }
  func.func @transform_3(%arg0: i32, %arg1: i32) -> (i32, i32) {
    %c0_i32 = arith.constant 0 : i32
    %c0_i32_0 = arith.constant 0 : i32
    %c0_i32_1 = arith.constant 0 : i32
    return %c0_i32, %c0_i32_0 : i32, i32
  }
  func.func @transform_4(%arg0: i32, %arg1: i32) -> (i32, i32) {
    %c0_i32 = arith.constant 0 : i32
    %c0_i32_0 = arith.constant 0 : i32
    %c0_i32_1 = arith.constant 0 : i32
    return %c0_i32, %c0_i32_0 : i32, i32
  }
  func.func @transform_5(%arg0: i32, %arg1: i32) -> (i32, i32, i32) {
    %c0_i32 = arith.constant 0 : i32
    %c0_i32_0 = arith.constant 0 : i32
    return %arg0, %c0_i32, %arg1 : i32, i32, i32
  }
}

module attributes {stable_mosaic.version = 11 : i64} {
  func.func @_decoder_kernel(%arg0: i32, %arg1: i32, %arg2: memref<1x4x256xf32, #tpu.memory_space<vmem>>, %arg3: memref<1x4x256xf32, #tpu.memory_space<vmem>>, %arg4: memref<8x4xf32, #tpu.memory_space<vmem>>, %arg5: memref<8x4xf32, #tpu.memory_space<vmem>>, %arg6: memref<8x1xf32, #tpu.memory_space<vmem>>, %arg7: memref<1x8x256xf32, #tpu.memory_space<vmem>>) attributes {dimension_semantics = [#tpu.dimension_semantics<parallel>, #tpu.dimension_semantics<parallel>], iteration_bounds = array<i64: 2, 1>, scalar_prefetch = 0 : i64, scratch_operands = 0 : i64, tpu.core_type = #tpu.core_type<tc>, window_params = [{transform_indices = @transform_0, window_bounds = array<i64: 1, 4, 256>}, {transform_indices = @transform_1, window_bounds = array<i64: 1, 4, 256>}, {pipeline_mode = #tpu.pipeline_mode<synchronous>, transform_indices = @transform_2, window_bounds = array<i64: 8, 4>}, {pipeline_mode = #tpu.pipeline_mode<synchronous>, transform_indices = @transform_3, window_bounds = array<i64: 8, 4>}, {pipeline_mode = #tpu.pipeline_mode<synchronous>, transform_indices = @transform_4, window_bounds = array<i64: 8, 1>}, {transform_indices = @transform_5, window_bounds = array<i64: 1, 8, 256>}]} {
    %c0 = arith.constant 0 : index
    %c0_0 = arith.constant 0 : index
    %0 = vector.load %arg4[%c0, %c0_0] : memref<8x4xf32, #tpu.memory_space<vmem>>, vector<8x4xf32>
    %c0_1 = arith.constant 0 : index
    %c0_2 = arith.constant 0 : index
    %c0_3 = arith.constant 0 : index
    %1 = vector.load %arg2[%c0_1, %c0_2, %c0_3] : memref<1x4x256xf32, #tpu.memory_space<vmem>>, vector<1x4x256xf32>
    %2 = vector.shape_cast %1 : vector<1x4x256xf32> to vector<4x256xf32>
    %cst = arith.constant dense<0.000000e+00> : vector<8x256xf32>
    %3 = tpu.matmul %0, %2, %cst {dimension_numbers = #tpu.dot_dimension_numbers<[1], [0], [0], [1], [0, 0, 1, 1], [], []>} : vector<8x4xf32>, vector<4x256xf32>, vector<8x256xf32> -> vector<8x256xf32>
    %c0_4 = arith.constant 0 : index
    %c0_5 = arith.constant 0 : index
    %4 = vector.load %arg5[%c0_4, %c0_5] : memref<8x4xf32, #tpu.memory_space<vmem>>, vector<8x4xf32>
    %c0_6 = arith.constant 0 : index
    %c0_7 = arith.constant 0 : index
    %c0_8 = arith.constant 0 : index
    %5 = vector.load %arg3[%c0_6, %c0_7, %c0_8] : memref<1x4x256xf32, #tpu.memory_space<vmem>>, vector<1x4x256xf32>
    %6 = vector.shape_cast %5 : vector<1x4x256xf32> to vector<4x256xf32>
    %cst_9 = arith.constant dense<0.000000e+00> : vector<8x256xf32>
    %7 = tpu.matmul %4, %6, %cst_9 {dimension_numbers = #tpu.dot_dimension_numbers<[1], [0], [0], [1], [0, 0, 1, 1], [], []>} : vector<8x4xf32>, vector<4x256xf32>, vector<8x256xf32> -> vector<8x256xf32>
    %8 = arith.addf %3, %7 : vector<8x256xf32>
    %c0_10 = arith.constant 0 : index
    %c0_11 = arith.constant 0 : index
    %9 = vector.load %arg6[%c0_10, %c0_11] : memref<8x1xf32, #tpu.memory_space<vmem>>, vector<8x1xf32>
    %10 = vector.broadcast %9 : vector<8x1xf32> to vector<8x256xf32>
    %11 = arith.addf %8, %10 : vector<8x256xf32>
    %c0_12 = arith.constant 0 : index
    %c0_13 = arith.constant 0 : index
    %c0_14 = arith.constant 0 : index
    %12 = vector.load %arg7[%c0_12, %c0_13, %c0_14] : memref<1x8x256xf32, #tpu.memory_space<vmem>>, vector<1x8x256xf32>
    %13 = vector.shape_cast %12 : vector<1x8x256xf32> to vector<8x256xf32>
    %14 = vector.shape_cast %11 : vector<8x256xf32> to vector<1x8x256xf32>
    tpu.vector_store %arg7[%c0_12, %c0_13, %c0_14], %14 {strides = array<i32>} : memref<1x8x256xf32, #tpu.memory_space<vmem>>, vector<1x8x256xf32>,
    return
  }
  func.func @transform_0(%arg0: i32, %arg1: i32) -> (i32, i32, i32) {
    %c0_i32 = arith.constant 0 : i32
    %c0_i32_0 = arith.constant 0 : i32
    return %arg0, %c0_i32, %arg1 : i32, i32, i32
  }
  func.func @transform_1(%arg0: i32, %arg1: i32) -> (i32, i32, i32) {
    %c0_i32 = arith.constant 0 : i32
    %c0_i32_0 = arith.constant 0 : i32
    return %arg0, %c0_i32, %arg1 : i32, i32, i32
  }
  func.func @transform_2(%arg0: i32, %arg1: i32) -> (i32, i32) {
    %c0_i32 = arith.constant 0 : i32
    %c0_i32_0 = arith.constant 0 : i32
    %c0_i32_1 = arith.constant 0 : i32
    return %c0_i32, %c0_i32_0 : i32, i32
  }
  func.func @transform_3(%arg0: i32, %arg1: i32) -> (i32, i32) {
    %c0_i32 = arith.constant 0 : i32
    %c0_i32_0 = arith.constant 0 : i32
    %c0_i32_1 = arith.constant 0 : i32
    return %c0_i32, %c0_i32_0 : i32, i32
  }
  func.func @transform_4(%arg0: i32, %arg1: i32) -> (i32, i32) {
    %c0_i32 = arith.constant 0 : i32
    %c0_i32_0 = arith.constant 0 : i32
    %c0_i32_1 = arith.constant 0 : i32
    return %c0_i32, %c0_i32_0 : i32, i32
  }
  func.func @transform_5(%arg0: i32, %arg1: i32) -> (i32, i32, i32) {
    %c0_i32 = arith.constant 0 : i32
    %c0_i32_0 = arith.constant 0 : i32
    return %arg0, %c0_i32, %arg1 : i32, i32, i32
  }
}

</mosaic_0001>

<bundles_post_ra>
// kernel: _decoder_forward_impl.1
= control target key start
LH: loop header
LB: loop body
LE: loop exit
PB: predicated region body
PF: predicated region fallthrough
CT: control target
= control target key end

     0   :  { %s690_s18 = smov 0   ;;  %s692_s19 = smov 0   ;;  %s739_s0 = inlined_call_operand.vmem [shape: f32[2,4,256], index: 0, kind: input, shape index: {}]   ;;  %s740_s1 = inlined_call_operand.vmem [shape: f32[2,4,256], index: 1, kind: input, shape index: {}]   ;;  %s741_s2 = inlined_call_operand.vmem [shape: f32[8,4], index: 2, kind: input, shape index: {}]   ;;  %s742_s3 = inlined_call_operand.vmem [shape: f32[8,4], index: 3, kind: input, shape index: {}]   ;;  %s743_s4 = inlined_call_operand.vmem [shape: f32[8,1], index: 4, kind: input, shape index: {}]   ;;  %s744_s5 = inlined_call_operand.vmem [shape: f32[2,8,256], index: 5, kind: output, shape index: {}]  }
   0x1   :  { %s694_s20 = smov 0  }
   0x2 LB: > { %s27_s21 = sadd.s32 1, %s652_s19  ;;  %p585_p0 = scmp.ge.s32.totalorder %s656_s20, 1  ;;  %s656_s20 = sphi %s694_s20, %s15_s20   ;;  %s652_s19 = sphi %s692_s19, %s746_s19   ;;  %s648_s18 = sphi %s690_s18, %s745_s18  }
   0x3   : > { %p29_p1 = scmp.ge.s32.totalorder %s27_s21, 2  ;;  %p225_p2 = scmp.lt.s32.totalorder %s656_s20, 3 }
   0x5   : > { %s748_s21 = smov (%p29_p1, %s27_s21), 0  ;;  %p226_p3 = pnand %p585_p0, %p225_p2 }
   0x6   : > { %p271_p4 = scmp.lt.s32.totalorder (!%p226_p3), %s648_s18, 1  ;;  %v658_v0 = vmov (!%p226_p3), 0.0   ;;  %v466_v1 = vld [vmem:[%s743_s4] sm:$0xff] (!%p226_p3)  ;;  %v659_v2 = vmov (!%p226_p3), 0   ;;  %vm310_vm0 = vcmask (!%p226_p3), 1043456   ;;  %vm306_vm1 = vcmask (!%p226_p3), 31744  }
   0x7   : > { %229 = sbr.rel (%p226_p3) target bundleno = 241 (0xf1), region = 40  ;;  %379 = vmatprep.mubr.f32.mxu1 (!%p226_p3), %v658_v0  ;;  %459 = vmatprep.mubr.f32.mxu0 (!%p226_p3), %v658_v0  ;;  %v302_v7 = vld [vmem:[%s742_s3] sm:$0xff] (!%p226_p3) }
   0x8   : > { %631 = vset.pattern.permute.xlu0 (!%p226_p3), %v659_v2  ;;  %v300_v8 = vld [vmem:[%s741_s2] sm:$0xff] (!%p226_p3) }
   0x9   : > { %469 = vperm.xlu0 (!%p226_p3), %631, %v466_v1  }
   0xe   : > { %s750_s18 = smov (!%p271_p4, %s648_s18), 1 }
   0xf   : > { %s600_s24 = sshll.u32 %s750_s18, 3  ;;  %s602_s10 = sshll.u32 %s750_s18, 4 }
  0x10   : > { %s288_s27 = scalar_lea.vmem %s740_s1, %s600_s24  ;;  %s278_s30 = scalar_lea.vmem %s739_s0, %s600_s24 }
  0x11   : > { %v303_v3 = vld [vmem:[%s288_s27] sm:$0xff]  ;;  %s298_s13 = scalar_lea.vmem %s744_s5, %s602_s10 }
  0x12   : > { %v301_v4 = vld [vmem:[%s278_s30] sm:$0xff]  ;;  %v305_v5 = vcombine.high %v303_v3, %v303_v3 }
  0x13   : > { %v387_v6 = vcombine.high %v301_v4, %v301_v4 }
  0x14   : > { %592 = vmatprep.subr.msk.mxu1 %vm310_vm0, %v305_v5 }
  0x15   : > { %595 = vmatprep.subr.msk.mxu0 %vm310_vm0, %v387_v6  ;;  %593 = vmatpush1.msk.msra.mxu1 %vm310_vm0, %v303_v3 }
  0x16   : > { %596 = vmatpush1.msk.msra.mxu0 %vm310_vm0, %v301_v4  ;;  %594 = vmatmul.mubr.msk.f32.vlgmr.msra.gmra.mrb[0].mxu1 %vm306_vm1, %v302_v7 }
  0x17   : > { %597 = vmatmul.mubr.msk.f32.vlgmr.msra.gmra.mrb[0].mxu0 %vm306_vm1, %v300_v8 }
  0x88   : > { %v470_v9 = vpop.permute.xlu0 %469 }
  0xe9   : > { %v381_v10 = vpop.f32.mrb[0].mxu1 }
  0xea   : > { %v461_v11 = vpop.f32.mrb[0].mxu0  ;;  %v383_v13 = vpop.f32.mrb[1].mxu1 }
  0xeb   : > { %v462_v12 = vadd.f32 %v461_v11, %v381_v10  ;;  %v463_v14 = vpop.f32.mrb[1].mxu0 }
  0xec   : > { %v464_v15 = vadd.f32 %v463_v14, %v383_v13 }
  0xed   : > { %v472_v16 = vadd.f32 %v470_v9, %v462_v12 }
  0xee   : > { %v473_v17 = vadd.f32 %v470_v9, %v464_v15 }
  0xef   : > { %474 = vst [vmem:[%s298_s13] sm:$0xff] %v472_v16 }
  0xf0   : > { %475 = vst [vmem:[%s298_s13 + $0x8] sm:$0xff] %v473_v17 }
  0xf1 PF: > { %s15_s20 = sadd.s32 1, %s656_s20   ;;  %s745_s18 = smov %s652_s19 }
  0xf2   : > { %p12_p5 = scmp.ge.s32.totalorder %s15_s20, 4   ;;  %s746_s19 = smov %s748_s21 }
  0xf4   :  { %14 = sbr.rel (!%p12_p5) target bundleno = 2 (0x2), region = 73 }

// kernel: _decoder_forward_impl.1
= control target key start
LH: loop header
LB: loop body
LE: loop exit
PB: predicated region body
PF: predicated region fallthrough
CT: control target
= control target key end

     0   :  { %s690_s18 = smov 0   ;;  %s692_s19 = smov 0   ;;  %s739_s0 = inlined_call_operand.vmem [shape: f32[2,4,256], index: 0, kind: input, shape index: {}]   ;;  %s740_s1 = inlined_call_operand.vmem [shape: f32[2,4,256], index: 1, kind: input, shape index: {}]   ;;  %s741_s2 = inlined_call_operand.vmem [shape: f32[8,4], index: 2, kind: input, shape index: {}]   ;;  %s742_s3 = inlined_call_operand.vmem [shape: f32[8,4], index: 3, kind: input, shape index: {}]   ;;  %s743_s4 = inlined_call_operand.vmem [shape: f32[8,1], index: 4, kind: input, shape index: {}]   ;;  %s744_s5 = inlined_call_operand.vmem [shape: f32[2,8,256], index: 5, kind: output, shape index: {}]  }
   0x1   :  { %s694_s20 = smov 0  }
   0x2 LB: > { %s27_s21 = sadd.s32 1, %s652_s19  ;;  %p585_p0 = scmp.ge.s32.totalorder %s656_s20, 1  ;;  %s656_s20 = sphi %s694_s20, %s15_s20   ;;  %s652_s19 = sphi %s692_s19, %s746_s19   ;;  %s648_s18 = sphi %s690_s18, %s745_s18  }
   0x3   : > { %p29_p1 = scmp.ge.s32.totalorder %s27_s21, 2  ;;  %p225_p2 = scmp.lt.s32.totalorder %s656_s20, 3 }
   0x5   : > { %s748_s21 = smov (%p29_p1, %s27_s21), 0  ;;  %p226_p3 = pnand %p585_p0, %p225_p2 }
   0x6   : > { %p271_p4 = scmp.lt.s32.totalorder (!%p226_p3), %s648_s18, 1  ;;  %v658_v0 = vmov (!%p226_p3), 0.0   ;;  %v466_v1 = vld [vmem:[%s743_s4] sm:$0xff] (!%p226_p3)  ;;  %v659_v2 = vmov (!%p226_p3), 0   ;;  %vm310_vm0 = vcmask (!%p226_p3), 1043456   ;;  %vm306_vm1 = vcmask (!%p226_p3), 31744  }
   0x7   : > { %229 = sbr.rel (%p226_p3) target bundleno = 241 (0xf1), region = 40  ;;  %379 = vmatprep.mubr.f32.mxu1 (!%p226_p3), %v658_v0  ;;  %459 = vmatprep.mubr.f32.mxu0 (!%p226_p3), %v658_v0  ;;  %v302_v7 = vld [vmem:[%s742_s3] sm:$0xff] (!%p226_p3) }
   0x8   : > { %631 = vset.pattern.permute.xlu0 (!%p226_p3), %v659_v2  ;;  %v300_v8 = vld [vmem:[%s741_s2] sm:$0xff] (!%p226_p3) }
   0x9   : > { %469 = vperm.xlu0 (!%p226_p3), %631, %v466_v1  }
   0xe   : > { %s750_s18 = smov (!%p271_p4, %s648_s18), 1 }
   0xf   : > { %s600_s24 = sshll.u32 %s750_s18, 3  ;;  %s602_s10 = sshll.u32 %s750_s18, 4 }
  0x10   : > { %s288_s27 = scalar_lea.vmem %s740_s1, %s600_s24  ;;  %s278_s30 = scalar_lea.vmem %s739_s0, %s600_s24 }
  0x11   : > { %v303_v3 = vld [vmem:[%s288_s27] sm:$0xff]  ;;  %s298_s13 = scalar_lea.vmem %s744_s5, %s602_s10 }
  0x12   : > { %v301_v4 = vld [vmem:[%s278_s30] sm:$0xff]  ;;  %v305_v5 = vcombine.high %v303_v3, %v303_v3 }
  0x13   : > { %v387_v6 = vcombine.high %v301_v4, %v301_v4 }
  0x14   : > { %592 = vmatprep.subr.msk.mxu1 %vm310_vm0, %v305_v5 }
  0x15   : > { %595 = vmatprep.subr.msk.mxu0 %vm310_vm0, %v387_v6  ;;  %593 = vmatpush1.msk.msra.mxu1 %vm310_vm0, %v303_v3 }
  0x16   : > { %596 = vmatpush1.msk.msra.mxu0 %vm310_vm0, %v301_v4  ;;  %594 = vmatmul.mubr.msk.f32.vlgmr.msra.gmra.mrb[0].mxu1 %vm306_vm1, %v302_v7 }
  0x17   : > { %597 = vmatmul.mubr.msk.f32.vlgmr.msra.gmra.mrb[0].mxu0 %vm306_vm1, %v300_v8 }
  0x88   : > { %v470_v9 = vpop.permute.xlu0 %469 }
  0xe9   : > { %v381_v10 = vpop.f32.mrb[0].mxu1 }
  0xea   : > { %v461_v11 = vpop.f32.mrb[0].mxu0  ;;  %v383_v13 = vpop.f32.mrb[1].mxu1 }
  0xeb   : > { %v462_v12 = vadd.f32 %v461_v11, %v381_v10  ;;  %v463_v14 = vpop.f32.mrb[1].mxu0 }
  0xec   : > { %v464_v15 = vadd.f32 %v463_v14, %v383_v13 }
  0xed   : > { %v472_v16 = vadd.f32 %v470_v9, %v462_v12 }
  0xee   : > { %v473_v17 = vadd.f32 %v470_v9, %v464_v15 }
  0xef   : > { %474 = vst [vmem:[%s298_s13] sm:$0xff] %v472_v16 }
  0xf0   : > { %475 = vst [vmem:[%s298_s13 + $0x8] sm:$0xff] %v473_v17 }
  0xf1 PF: > { %s15_s20 = sadd.s32 1, %s656_s20   ;;  %s745_s18 = smov %s652_s19 }
  0xf2   : > { %p12_p5 = scmp.ge.s32.totalorder %s15_s20, 4   ;;  %s746_s19 = smov %s748_s21 }
  0xf4   :  { %14 = sbr.rel (!%p12_p5) target bundleno = 2 (0x2), region = 73 }

</bundles_post_ra>
